<compile_context>
chip_gen: v7x
topology: tpu7x:2x2x1
jax: 0.10.0
libtpu: 0.0.40
codegen_flags: <defaults>
</compile_context>

<pallas_src>
import jax
import jax.numpy as jnp
from jax.experimental import pallas as pl
from jax.experimental.pallas import tpu as pltpu

# Model dims implied by the module: fc1: 6->64, fc2: 64->32, fc3: 32->2
IN_FEATURES = 6   # len(features) in the reference script
H1 = 64
H2 = 32
OUT = 2


def trading_nn_kernel(xt_ref, w1_ref, b1_ref, w2_ref, b2_ref, w3_ref, b3_ref, ot_ref):
    """Forward pass on one batch tile, feature-major: y^T = W3(relu(W2 relu(W1 x^T + b1) + b2)) + b3."""
    xt = xt_ref[...]                                                      # [6, BT]  bf16
    h1 = jnp.dot(w1_ref[...], xt, preferred_element_type=jnp.float32)     # [64, BT] f32 acc
    h1 = jnp.maximum(h1 + b1_ref[...], 0.0)                               # bias + ReLU in f32
    h1 = h1.astype(w2_ref.dtype)                                          # bf16 for MXU
    h2 = jnp.dot(w2_ref[...], h1, preferred_element_type=jnp.float32)     # [32, BT]
    h2 = jnp.maximum(h2 + b2_ref[...], 0.0)
    h2 = h2.astype(w3_ref.dtype)
    y = jnp.dot(w3_ref[...], h2, preferred_element_type=jnp.float32)      # [2, BT]
    ot_ref[...] = (y + b3_ref[...]).astype(ot_ref.dtype)                  # lane-dense store


def trading_nn_forward(x, params, *, bt=2048):
    """x: [B, IN_FEATURES] f32.  Returns [B, OUT] f32.  Batch is tiled by `bt` rows."""
    w1, b1, w2, b2, w3, b3 = params
    B = x.shape[0]
    n_tiles = pl.cdiv(B, bt)
    Bp = n_tiles * bt

    # Feature-major + bf16 inputs/weights at the call boundary (biases stay f32).
    xt = jnp.transpose(x).astype(jnp.bfloat16)                 # [F, B]
    if Bp != B:
        xt = jnp.pad(xt, ((0, 0), (0, Bp - B)))
    w1b = w1.astype(jnp.bfloat16)
    w2b = w2.astype(jnp.bfloat16)
    w3b = w3.astype(jnp.bfloat16)

    flops = 2 * Bp * (IN_FEATURES * H1 + H1 * H2 + H2 * OUT)
    bytes_accessed = (
        xt.size * 2                                    # bf16 input stream
        + Bp * OUT * 4                                 # f32 output stream
        + (w1b.size + w2b.size + w3b.size) * 2         # bf16 weights (once)
        + (b1.size + b2.size + b3.size) * 4            # f32 biases (once)
    )

    const = lambda i: (0, 0)
    out_t = pl.pallas_call(
        trading_nn_kernel,
        out_shape=jax.ShapeDtypeStruct((OUT, Bp), jnp.float32),
        grid_spec=pltpu.PrefetchScalarGridSpec(
            num_scalar_prefetch=0,
            grid=(n_tiles,),
            in_specs=[
                pl.BlockSpec((IN_FEATURES, bt), lambda i: (0, i)),   # batch-tiled input
                pl.BlockSpec((H1, IN_FEATURES), const),              # weights/biases stay resident
                pl.BlockSpec((H1, 1), const),
                pl.BlockSpec((H2, H1), const),
                pl.BlockSpec((H2, 1), const),
                pl.BlockSpec((OUT, H2), const),
                pl.BlockSpec((OUT, 1), const),
            ],
            out_specs=pl.BlockSpec((OUT, bt), lambda i: (0, i)),     # lane-dense output tile
        ),
        compiler_params=pltpu.CompilerParams(
            dimension_semantics=("parallel",)),                      # megacore shard on v7x
        cost_estimate=pl.CostEstimate(
            flops=flops, transcendentals=0, bytes_accessed=bytes_accessed),
    )(xt, w1b, b1, w2b, b2, w3b, b3)

    return jnp.transpose(out_t)[:B]                                  # back to [B, OUT]


def init_params(key):
    """PyTorch nn.Linear-style init. Weights stored [out, in] (feature-major compute), biases [out, 1]."""
    keys = jax.random.split(key, 6)

    def linear(kw, kb, fan_in, fan_out):
        bound = 1.0 / jnp.sqrt(jnp.float32(fan_in))
        w = jax.random.uniform(kw, (fan_out, fan_in), jnp.float32, -bound, bound)
        b = jax.random.uniform(kb, (fan_out, 1), jnp.float32, -bound, bound)
        return w, b

    w1, b1 = linear(keys[0], keys[1], IN_FEATURES, H1)
    w2, b2 = linear(keys[2], keys[3], H1, H2)
    w3, b3 = linear(keys[4], keys[5], H2, OUT)
    return (w1, b1, w2, b2, w3, b3)


def reference_forward(x, params):
    """Pure-f32 JAX reference of the PyTorch forward."""
    w1, b1, w2, b2, w3, b3 = params
    h1 = jnp.maximum(x @ w1.T + b1.T, 0.0)
    h2 = jnp.maximum(h1 @ w2.T + b2.T, 0.0)
    return h2 @ w3.T + b3.T


def reference_forward_mixed(x, params):
    """Reference matching the kernel's mixed precision (bf16 inputs/weights/intermediates, f32 accum)."""
    w1, b1, w2, b2, w3, b3 = params
    q = lambda a: a.astype(jnp.bfloat16).astype(jnp.float32)
    h1 = jnp.maximum(q(x) @ q(w1).T + b1.T, 0.0)
    h2 = jnp.maximum(q(h1) @ q(w2).T + b2.T, 0.0)
    return q(h2) @ q(w3).T + b3.T


if __name__ == "__main__":
    key = jax.random.PRNGKey(0)
    k_params, k_x = jax.random.split(key)

    params = init_params(k_params)
    B = 256  # small batch of rows of the 6 trading features
    x = jax.random.normal(k_x, (B, IN_FEATURES), dtype=jnp.float32)

    # bt=128 at this small B -> grid of 2 batch tiles (exercises the pipeline).
    out = trading_nn_forward(x, params, bt=128)
    out = jax.block_until_ready(out)

    assert out.shape == (B, OUT)
    ref_mixed = reference_forward_mixed(x, params)
    ref_f32 = reference_forward(x, params)
    assert jnp.allclose(out, ref_mixed, atol=1e-3, rtol=1e-3), "mismatch vs mixed-precision reference"
    assert jnp.allclose(out, ref_f32, atol=1e-1, rtol=1e-1), "mismatch vs f32 reference"

    print("KERNEL_OK")
</pallas_src>

<mosaic_0001>
module attributes {stable_mosaic.version = 11 : i64} {
  func.func @trading_nn_kernel(%arg0: i32, %arg1: memref<6x128xbf16, #tpu.memory_space<vmem>>, %arg2: memref<64x6xbf16, #tpu.memory_space<vmem>>, %arg3: memref<64x1xf32, #tpu.memory_space<vmem>>, %arg4: memref<32x64xbf16, #tpu.memory_space<vmem>>, %arg5: memref<32x1xf32, #tpu.memory_space<vmem>>, %arg6: memref<2x32xbf16, #tpu.memory_space<vmem>>, %arg7: memref<2x1xf32, #tpu.memory_space<vmem>>, %arg8: memref<2x128xf32, #tpu.memory_space<vmem>>) attributes {dimension_semantics = [#tpu.dimension_semantics<parallel>], iteration_bounds = array<i64: 2>, scalar_prefetch = 0 : i64, scratch_operands = 0 : i64, tpu.core_type = #tpu.core_type<tc>, window_params = [{transform_indices = @transform_0, window_bounds = array<i64: 6, 128>}, {pipeline_mode = #tpu.pipeline_mode<synchronous>, transform_indices = @transform_1, window_bounds = array<i64: 64, 6>}, {pipeline_mode = #tpu.pipeline_mode<synchronous>, transform_indices = @transform_2, window_bounds = array<i64: 64, 1>}, {pipeline_mode = #tpu.pipeline_mode<synchronous>, transform_indices = @transform_3, window_bounds = array<i64: 32, 64>}, {pipeline_mode = #tpu.pipeline_mode<synchronous>, transform_indices = @transform_4, window_bounds = array<i64: 32, 1>}, {pipeline_mode = #tpu.pipeline_mode<synchronous>, transform_indices = @transform_5, window_bounds = array<i64: 2, 32>}, {pipeline_mode = #tpu.pipeline_mode<synchronous>, transform_indices = @transform_6, window_bounds = array<i64: 2, 1>}, {transform_indices = @transform_7, window_bounds = array<i64: 2, 128>}]} {
    %c0 = arith.constant 0 : index
    %c0_0 = arith.constant 0 : index
    %0 = vector.load %arg1[%c0, %c0_0] : memref<6x128xbf16, #tpu.memory_space<vmem>>, vector<6x128xbf16>
    %c0_1 = arith.constant 0 : index
    %c0_2 = arith.constant 0 : index
    %1 = vector.load %arg2[%c0_1, %c0_2] : memref<64x6xbf16, #tpu.memory_space<vmem>>, vector<64x6xbf16>
    %cst = arith.constant dense<0.000000e+00> : vector<64x128xf32>
    %2 = tpu.matmul %1, %0, %cst {dimension_numbers = #tpu.dot_dimension_numbers<[1], [0], [0], [1], [0, 0, 1, 1], [], []>} : vector<64x6xbf16>, vector<6x128xbf16>, vector<64x128xf32> -> vector<64x128xf32>
    %c0_3 = arith.constant 0 : index
    %c0_4 = arith.constant 0 : index
    %3 = vector.load %arg3[%c0_3, %c0_4] : memref<64x1xf32, #tpu.memory_space<vmem>>, vector<64x1xf32>
    %4 = vector.broadcast %3 : vector<64x1xf32> to vector<64x128xf32>
    %5 = arith.addf %2, %4 : vector<64x128xf32>
    %cst_5 = arith.constant 0.000000e+00 : f32
    %6 = vector.broadcast %cst_5 : f32 to vector<64x128xf32>
    %7 = arith.maximumf %5, %6 : vector<64x128xf32>
    %8 = arith.truncf %7 : vector<64x128xf32> to vector<64x128xbf16>
    %c0_6 = arith.constant 0 : index
    %c0_7 = arith.constant 0 : index
    %9 = vector.load %arg4[%c0_6, %c0_7] : memref<32x64xbf16, #tpu.memory_space<vmem>>, vector<32x64xbf16>
    %cst_8 = arith.constant dense<0.000000e+00> : vector<32x128xf32>
    %10 = tpu.matmul %9, %8, %cst_8 {dimension_numbers = #tpu.dot_dimension_numbers<[1], [0], [0], [1], [0, 0, 1, 1], [], []>} : vector<32x64xbf16>, vector<64x128xbf16>, vector<32x128xf32> -> vector<32x128xf32>
    %c0_9 = arith.constant 0 : index
    %c0_10 = arith.constant 0 : index
    %11 = vector.load %arg5[%c0_9, %c0_10] : memref<32x1xf32, #tpu.memory_space<vmem>>, vector<32x1xf32>
    %12 = vector.broadcast %11 : vector<32x1xf32> to vector<32x128xf32>
    %13 = arith.addf %10, %12 : vector<32x128xf32>
    %cst_11 = arith.constant 0.000000e+00 : f32
    %14 = vector.broadcast %cst_11 : f32 to vector<32x128xf32>
    %15 = arith.maximumf %13, %14 : vector<32x128xf32>
    %16 = arith.truncf %15 : vector<32x128xf32> to vector<32x128xbf16>
    %c0_12 = arith.constant 0 : index
    %c0_13 = arith.constant 0 : index
    %17 = vector.load %arg6[%c0_12, %c0_13] : memref<2x32xbf16, #tpu.memory_space<vmem>>, vector<2x32xbf16>
    %cst_14 = arith.constant dense<0.000000e+00> : vector<2x128xf32>
    %18 = tpu.matmul %17, %16, %cst_14 {dimension_numbers = #tpu.dot_dimension_numbers<[1], [0], [0], [1], [0, 0, 1, 1], [], []>} : vector<2x32xbf16>, vector<32x128xbf16>, vector<2x128xf32> -> vector<2x128xf32>
    %c0_15 = arith.constant 0 : index
    %c0_16 = arith.constant 0 : index
    %19 = vector.load %arg7[%c0_15, %c0_16] : memref<2x1xf32, #tpu.memory_space<vmem>>, vector<2x1xf32>
    %20 = vector.broadcast %19 : vector<2x1xf32> to vector<2x128xf32>
    %21 = arith.addf %18, %20 : vector<2x128xf32>
    %c0_17 = arith.constant 0 : index
    %c0_18 = arith.constant 0 : index
    %22 = vector.load %arg8[%c0_17, %c0_18] : memref<2x128xf32, #tpu.memory_space<vmem>>, vector<2x128xf32>
    tpu.vector_store %arg8[%c0_17, %c0_18], %21 {strides = array<i32>} : memref<2x128xf32, #tpu.memory_space<vmem>>, vector<2x128xf32>,
    return
  }
  func.func @transform_0(%arg0: i32) -> (i32, i32) {
    %c0_i32 = arith.constant 0 : i32
    %c0_i32_0 = arith.constant 0 : i32
    return %c0_i32, %arg0 : i32, i32
  }
  func.func @transform_1(%arg0: i32) -> (i32, i32) {
    %c0_i32 = arith.constant 0 : i32
    %c0_i32_0 = arith.constant 0 : i32
    %c0_i32_1 = arith.constant 0 : i32
    return %c0_i32, %c0_i32_0 : i32, i32
  }
  func.func @transform_2(%arg0: i32) -> (i32, i32) {
    %c0_i32 = arith.constant 0 : i32
    %c0_i32_0 = arith.constant 0 : i32
    %c0_i32_1 = arith.constant 0 : i32
    return %c0_i32, %c0_i32_0 : i32, i32
  }
  func.func @transform_3(%arg0: i32) -> (i32, i32) {
    %c0_i32 = arith.constant 0 : i32
    %c0_i32_0 = arith.constant 0 : i32
    %c0_i32_1 = arith.constant 0 : i32
    return %c0_i32, %c0_i32_0 : i32, i32
  }
  func.func @transform_4(%arg0: i32) -> (i32, i32) {
    %c0_i32 = arith.constant 0 : i32
    %c0_i32_0 = arith.constant 0 : i32
    %c0_i32_1 = arith.constant 0 : i32
    return %c0_i32, %c0_i32_0 : i32, i32
  }
  func.func @transform_5(%arg0: i32) -> (i32, i32) {
    %c0_i32 = arith.constant 0 : i32
    %c0_i32_0 = arith.constant 0 : i32
    %c0_i32_1 = arith.constant 0 : i32
    return %c0_i32, %c0_i32_0 : i32, i32
  }
  func.func @transform_6(%arg0: i32) -> (i32, i32) {
    %c0_i32 = arith.constant 0 : i32
    %c0_i32_0 = arith.constant 0 : i32
    %c0_i32_1 = arith.constant 0 : i32
    return %c0_i32, %c0_i32_0 : i32, i32
  }
  func.func @transform_7(%arg0: i32) -> (i32, i32) {
    %c0_i32 = arith.constant 0 : i32
    %c0_i32_0 = arith.constant 0 : i32
    return %c0_i32, %arg0 : i32, i32
  }
}

</mosaic_0001>

<bundles_post_ra>
// kernel: tpu_custom_call.1
= control target key start
LH: loop header
LB: loop body
LE: loop exit
PB: predicated region body
PF: predicated region fallthrough
CT: control target
= control target key end

     0   :  { %12 = vsyncpa [#allocation3], 0  ;;  %s1063_s0 = inlined_call_operand.vmem [shape: bf16[6,256], index: 0, kind: input, shape index: {}]   ;;  %s1064_s1 = inlined_call_operand.vmem [shape: bf16[64,6], index: 1, kind: input, shape index: {}]   ;;  %s1065_s2 = inlined_call_operand.vmem [shape: f32[64,1], index: 2, kind: input, shape index: {}]   ;;  %s1066_s3 = inlined_call_operand.vmem [shape: bf16[32,64], index: 3, kind: input, shape index: {}]   ;;  %s1067_s4 = inlined_call_operand.vmem [shape: f32[32,1], index: 4, kind: input, shape index: {}]   ;;  %s1068_s5 = inlined_call_operand.vmem [shape: bf16[2,32], index: 5, kind: input, shape index: {}]   ;;  %s1069_s6 = inlined_call_operand.vmem [shape: f32[2,1], index: 6, kind: input, shape index: {}]   ;;  %s1070_s7 = inlined_call_operand.hbm [shape: f32[2,256], index: 7, kind: output, shape index: {}]  }
   0x1   :  { %14 = vsyncpa [#allocation3 + $0x1], 0  ;;  %s897_s24 = smov 0   ;;  %s899_s25 = smov 0  }
   0x2   :  { %s901_s26 = smov 0   ;;  %s903_s27 = smov 0  }
   0x3 LB: > { %s918_s28 = sadd.s32 4294967295, %s851_s27   ;;  %s671_s29 = sadd.s32 4294967294, %s851_s27   ;;  %s851_s27 = sphi %s903_s27, %s1076_s27   ;;  %s847_s26 = sphi %s901_s26, %s1075_s26   ;;  %s843_s25 = sphi %s899_s25, %s1074_s25   ;;  %s839_s24 = sphi %s897_s24, %s1073_s24  }
   0x4   : > { %s922_s30 = sadd.s32 1, %s851_s27   ;;  %s179_s8 = sadd.s32 1, %s847_s26 }
   0x5   : > { %s176_s9 = ssub.s32 %s851_s27, %s922_s30  ;;  %p189_p0 = scmp.ne.s32.totalorder %s847_s26, %s843_s25 }
   0x6   : > { %p177_p1 = scmp.eq.s32.totalorder %s176_s9, 0  ;;  %p190_p2 = scmp.eq.s32.totalorder %s918_s28, 1 }
   0x7   : > { %p195_p3 = scmp.ne.s32.totalorder %s843_s25, %s839_s24  ;;  %p196_p4 = scmp.eq.s32.totalorder %s671_s29, 1 }
   0x8   : > { %s933_s10 = scalar_select %p177_p1, %s847_s26, %s179_s8  }
   0x9   : > { %p935_p5 = por %p190_p2, %p189_p0  ;;  %p939_p6 = por %p196_p4, %p195_p3 }
   0xa   : > { %p674_p7 = scmp.ge.s32.totalorder %s851_s27, 1  ;;  %p239_p8 = scmp.lt.s32.totalorder %s851_s27, 3 }
   0xc   : > { %p240_p9 = pnand %p674_p7, %p239_p8 }
   0xd   : > { %p270_p10 = scmp.lt.s32.totalorder (!%p240_p9), %s918_s28, 1  ;;  %v783_v0 = vld [vmem:[%s1064_s1] sm:$0xff] (!%p240_p9)   ;;  %vm352_vm0 = vcmask (!%p240_p9), 48128   ;;  %vm365_vm1 = vcmask (!%p240_p9), 1042432   ;;  %v853_v1 = vmov (!%p240_p9), 0   ;;  %v286_v3 = vld [vmem:[%s1065_s2 + $0x10] sm:$0xff] (!%p240_p9) }
   0xe   : > { %243 = sbr.rel (%p240_p9) target bundleno = 723 (0x2d3), region = 48  ;;  %710 = vmatprep.mubr.msk.bf16.mxu0 (!%p240_p9), %vm352_vm0, %v783_v0  ;;  %781 = vset.pattern.permute.xlu0 (!%p240_p9), %v853_v1  ;;  %v284_v2 = vld [vmem:[%s1065_s2] sm:$0xff] (!%p240_p9)  ;;  %v285_v5 = vld [vmem:[%s1065_s2 + $0x8] sm:$0xff] (!%p240_p9)  ;;  %v287_v8 = vld [vmem:[%s1065_s2 + $0x18] sm:$0xff] (!%p240_p9)  ;;  %vm484_vm2 = vcmask (!%p240_p9), 523264   ;;  %v854_v58 = vmov (!%p240_p9), 0.0  }
   0xf   : > { %782 = vset.pattern.permute.xlu1 (!%p240_p9), %v853_v1  ;;  %294 = vperm.xlu0 (!%p240_p9), %781, %v284_v2   ;;  %v784_v7 = vld [vmem:[%s1064_s1 + $0x8] sm:$0xff] (!%p240_p9)   ;;  %v785_v9 = vld [vmem:[%s1064_s1 + $0x10] sm:$0xff] (!%p240_p9)   ;;  %v288_v10 = vld [vmem:[%s1065_s2 + $0x20] sm:$0xff] (!%p240_p9)  ;;  %vm855_vm3 = vmmov (!%p240_p9), 0   ;;  %vm553_vm4 = vcmask (!%p240_p9), 261120   ;;  %s691_s18 = sshll.u32 (!%p240_p9), %s918_s28, 5 }
  0x10   : > { %304 = vperm.xlu1 (!%p240_p9), %782, %v286_v3   ;;  %v289_v11 = vld [vmem:[%s1065_s2 + $0x28] sm:$0xff] (!%p240_p9)  ;;  %v290_v12 = vld [vmem:[%s1065_s2 + $0x30] sm:$0xff] (!%p240_p9)  ;;  %v786_v13 = vld [vmem:[%s1064_s1 + $0x18] sm:$0xff] (!%p240_p9)   ;;  %s1021_s23 = scalar_lea.hbm (!%p240_p9), %s1070_s7, %s691_s18  ;;  %s856_s8 = smov (!%p240_p9), [#allocation2]  }
  0x11   : > { %v291_v14 = vld [vmem:[%s1065_s2 + $0x38] sm:$0xff] (!%p240_p9)  ;;  %v450_v15 = vld [vmem:[%s1067_s4] sm:$0xff] (!%p240_p9)  ;;  %v451_v16 = vld [vmem:[%s1067_s4 + $0x8] sm:$0xff] (!%p240_p9)  ;;  %s793_s9 = sshll.u32 (!%p240_p9), %s856_s8, 4  ;;  %s794_s9 = int_to_ptr.vmem [resolvable:$false] %s793_s9 }
  0x12   : > { %v452_v17 = vld [vmem:[%s1067_s4 + $0x10] sm:$0xff] (!%p240_p9)  ;;  %v453_v18 = vld [vmem:[%s1067_s4 + $0x18] sm:$0xff] (!%p240_p9)  ;;  %v547_v19 = vld [vmem:[%s1069_s6] sm:$0x3] (!%p240_p9)  ;;  %s795_s13 = scalar_lea.vmem (!%p240_p9), %s794_s9, 64 }
  0x13   : > { %299 = vperm.xlu0 (!%p240_p9), %781, %v285_v5   ;;  %v787_v20 = vld [vmem:[%s1066_s3] sm:$0xff] (!%p240_p9)   ;;  %v788_v57 = vld [vmem:[%s1066_s3 + $0x8] sm:$0xff] (!%p240_p9)  }
  0x14   : > { %309 = vperm.xlu1 (!%p240_p9), %782, %v287_v8   ;;  %726 = vmatprep.mubr.msk.bf16.mxu1 (!%p240_p9), %vm484_vm2, %v787_v20 }
  0x15   : > { %s271_s15 = scalar_select %p270_p10, %s918_s28, 1 }
  0x17   : > { %s676_s16 = sshll.u32 %s271_s15, 2  ;;  %314 = vperm.xlu0 %781, %v288_v10  }
  0x18   : > { %s273_s21 = scalar_lea.vmem %s1063_s0, %s676_s16  ;;  %319 = vperm.xlu1 %782, %v289_v11   ;;  %s267_s16 = sand.u32 1, %s843_s25  }
  0x19   : > { %v275_v4 = vld [vmem:[%s273_s21] sm:$0x7]  ;;  %s675_s17 = sshll.u32 %s267_s16, 1  ;;  %s599_s28 = scalar_lea.sflag [#allocation3], %s267_s16 }
  0x1a   : > { %738 = vmatprep.subr.msk.bf16.mxu0 %vm365_vm1, %v275_v4  ;;  %v367_v6 = vsel %vm365_vm1, %v275_v4, 0  ;;  %s269_s19 = scalar_lea.vmem [#allocation2], %s675_s17 }
  0x1b   : > { %709 = vmatpush3.bf16.msra.mxu0 %v367_v6  ;;  %324 = vperm.xlu0 %781, %v290_v12   ;;  %s612_s20 = sshll.u32 %s269_s19, 4  ;;  %s1023_s20 = int_to_ptr.vmem [resolvable:$true] %s612_s20 }
  0x1c   : > { %329 = vperm.xlu1 %782, %v291_v14   ;;  %730 = vmatprep.subr.bf16.mxu0 %v854_v58  ;;  %s789_s29 = scalar_lea.vmem %s1023_s20, 32  ;;  %p796_p0 = scmp.lt.s32.totalorder %s1023_s20, %s794_s9 }
  0x1d   : > { %p790_p11 = scmp.ne.s32.totalorder %s1023_s20, %s789_s29  ;;  %p797_p1 = scmp.lt.s32.totalorder %s795_s13, %s789_s29 }
  0x1e   : > { %711 = vmatmul.mubr.msk.bf16.vlgmr.msra.gmra.mrb[0].mxu0 %vm352_vm0, %v784_v7 }
  0x1f   : > { %714 = vmatprep.mubr.msk.bf16.mxu0 %vm352_vm0, %v785_v9  ;;  %456 = vperm.xlu0 %781, %v450_v15   ;;  %p791_p12 = pnand %p790_p11, %p935_p5  ;;  %p798_p2 = por %p797_p1, %p796_p0 }
  0x20   : > { %461 = vperm.xlu1 %782, %v451_v16  }
  0x21   : > { %p792_p13 = pneg %p791_p12 }
  0x23   : > { %466 = vperm.xlu0 %781, %v452_v17   ;;  %p799_p3 = pnand %p798_p2, %p792_p13 }
  0x24   : > { %471 = vperm.xlu1 %782, %v453_v18  }
  0x26   : > { %715 = vmatmul.mubr.msk.bf16.gmra.mrb[4].mxu0 %vm352_vm0, %v786_v13  ;;  %v546_v13 = vld [vmem:[%s1068_s5] sm:$0x1] }
  0x27   : > { %550 = vperm.xlu0 %781, %v547_v19   ;;  %734 = vmatprep.mubr.msk.bf16.mxu0 %vm855_vm3, %v854_v58 }
  0x8e   : > { %v295_v21 = vpop.permute.xlu0 %294 }
  0x8f   : > { %v305_v22 = vpop.permute.xlu1 %304 }
  0x92   : > { %v300_v23 = vpop.permute.xlu0 %299 }
  0x93   : > { %v310_v24 = vpop.permute.xlu1 %309 }
  0x96   : > { %v315_v28 = vpop.permute.xlu0 %314 }
  0x97   : > { %v320_v33 = vpop.permute.xlu1 %319 }
  0x9a   : > { %v325_v40 = vpop.permute.xlu0 %324 }
  0x9b   : > { %v330_v45 = vpop.permute.xlu1 %329 }
  0x9e   : > { %v457_v59 = vpop.permute.xlu0 %456 }
  0x9f   : > { %v462_v60 = vpop.permute.xlu1 %461 }
  0xa2   : > { %v467_v61 = vpop.permute.xlu0 %466 }
  0xa3   : > { %v472_v1 = vpop.permute.xlu1 %471 }
  0xa6   : > { %v551_v14 = vpop.permute.xlu0 %550 }
  0xf1   : > { %v712_v25 = vpop.f32.mrb[0].mxu0 }
  0xf2   : > { %v412_v26 = vadd.f32 %v712_v25, %v305_v22  ;;  %v403_v27 = vpop.f32.mrb[1].mxu0 }
  0xf3   : > { %v404_v29 = vadd.f32 %v403_v27, %v295_v21  ;;  %v713_v30 = vpop.f32.mrb[2].mxu0 }
  0xf4   : > { %v415_v31 = vadd.f32 %v713_v30, %v310_v24  ;;  %v406_v32 = vpop.f32.mrb[3].mxu0  ;;  %v436_v35 = vmax.f32 %v412_v26, 0.0 }
  0xf5   : > { %v407_v34 = vadd.f32 %v406_v32, %v300_v23  ;;  %v434_v37 = vmax.f32 %v404_v29, 0.0 }
  0xf6   : > { %v437_v36 = vmax.f32 %v415_v31, 0.0 }
  0xf7   : > { %v435_v38 = vmax.f32 %v407_v34, 0.0 }
  0xf8   : > { %v443_v39 = vpack.c.bf16 %v437_v36, %v436_v35 }
  0xf9   : > { %v716_v41 = vpop.f32.mrb[4].mxu0  ;;  %v442_v42 = vpack.c.bf16 %v435_v38, %v434_v37 }
  0xfa   : > { %v428_v43 = vadd.f32 %v716_v41, %v325_v40  ;;  %v419_v44 = vpop.f32.mrb[5].mxu0 }
  0xfb   : > { %v420_v46 = vadd.f32 %v419_v44, %v315_v28  ;;  %v717_v47 = vpop.f32.mrb[6].mxu0  ;;  %718 = vmatprep.subr.bf16.mxu1 %v442_v42 }
  0xfc   : > { %v431_v48 = vadd.f32 %v717_v47, %v330_v45  ;;  %v422_v49 = vpop.f32.mrb[7].mxu0  ;;  %719 = vmatpush3.bf16.msra.mxu1 %v442_v42  ;;  %v440_v51 = vmax.f32 %v428_v43, 0.0 }
  0xfd   : > { %v423_v50 = vadd.f32 %v422_v49, %v320_v33  ;;  %720 = vmatprep.subr.bf16.mxu1 %v443_v39  ;;  %v438_v53 = vmax.f32 %v420_v46, 0.0 }
  0xfe   : > { %v441_v52 = vmax.f32 %v431_v48, 0.0 }
  0xff   : > { %v439_v54 = vmax.f32 %v423_v50, 0.0 }
 0x100   : > { %v445_v55 = vpack.c.bf16 %v441_v52, %v440_v51  ;;  %721 = vmatpush3.bf16.msra.mxu1 %v443_v39 }
 0x101   : > { %v444_v56 = vpack.c.bf16 %v439_v54, %v438_v53 }
 0x103   : > { %722 = vmatprep.subr.bf16.mxu1 %v444_v56 }
 0x104   : > { %723 = vmatpush3.bf16.msra.mxu1 %v444_v56 }
 0x105   : > { %724 = vmatprep.subr.bf16.mxu1 %v445_v55 }
 0x108   : > { %725 = vmatpush3.bf16.msra.mxu1 %v445_v55 }
 0x10b   : > { %727 = vmatmul.mubr.msk.bf16.vlgmr.msra.gmra.mrb[0].mxu1 %vm484_vm2, %v788_v57 }
 0x1de   : > { %v728_v62 = vpop.f32.mrb[0].mxu1 }
 0x1df   : > { %v534_v63 = vadd.f32 %v728_v62, %v467_v61  ;;  %v525_v0 = vpop.f32.mrb[1].mxu1 }
 0x1e0   : > { %v526_v2 = vadd.f32 %v525_v0, %v457_v59  ;;  %v729_v3 = vpop.f32.mrb[2].mxu1 }
 0x1e1   : > { %v537_v4 = vadd.f32 %v729_v3, %v472_v1  ;;  %v528_v5 = vpop.f32.mrb[3].mxu1  ;;  %v542_v7 = vmax.f32 %v534_v63, 0.0 }
 0x1e2   : > { %v529_v6 = vadd.f32 %v528_v5, %v462_v60  ;;  %v540_v9 = vmax.f32 %v526_v2, 0.0 }
 0x1e3   : > { %v543_v8 = vmax.f32 %v537_v4, 0.0 }
 0x1e4   : > { %v541_v10 = vmax.f32 %v529_v6, 0.0 }
 0x1e5   : > { %v545_v11 = vpack.c.bf16 %v543_v8, %v542_v7 }
 0x1e6   : > { %v544_v12 = vpack.c.bf16 %v541_v10, %v540_v9 }
 0x1e8   : > { %731 = vmatpush3.bf16.msra.mxu0 %v544_v12 }
 0x1e9   : > { %732 = vmatprep.subr.bf16.mxu0 %v854_v58 }
 0x1ec   : > { %733 = vmatpush3.bf16.msra.mxu0 %v545_v11 }
 0x1ef   : > { %735 = vmatmul.mubr.msk.bf16.vlgmr.msra.gmra.mrb[8].mxu0 %vm553_vm4, %v546_v13 }
 0x2c2   : > { %v591_v15 = vpop.f32.mrb[8].mxu0 }
 0x2c3   : > { %v592_v16 = vadd.f32 %v591_v15, %v551_v14  ;;  %v736_v17 = vpop.f32.mrb[9].mxu0 }
 0x2c4   : > { %v594_v18 = vpop.f32.mrb[10].mxu0 }
 0x2c5   : > { %597 = vst [vmem:[%s269_s19] sm:$0x3] %v592_v16  ;;  %v737_v19 = vpop.f32.mrb[11].mxu0 }
 0x2c6   : > { %802 = shalt.err (!%p799_p3)
}
 0x2c7   : > { %s803_s14 = scalar_lea.hbm %s1021_s23, 32  ;;  %s807_s17 = scalar_lea.hbm %s1070_s7, 64 }
 0x2c8   : > { %p804_p4 = scmp.ne.s32.totalorder %s1021_s23, %s803_s14  ;;  %p808_p9 = scmp.lt.u32.totalorder %s1021_s23, %s1070_s7 }
 0x2c9   : > { %p809_p10 = scmp.lt.u32.totalorder %s807_s17, %s803_s14  ;;  %p811_p12 = scmp.lt.u32.totalorder %s803_s14, %s1021_s23 }
 0x2ca   : > { %p805_p7 = pnand %p804_p4, %p935_p5 }
 0x2cb   : > { %p810_p11 = por %p809_p10, %p808_p9 }
 0x2cc   : > { %p806_p8 = pneg %p805_p7 }
 0x2cd   : > { %p812_p13 = por %p811_p12, %p810_p11 }
 0x2cf   : > { %p813_p0 = pnand %p812_p13, %p806_p8 }
 0x2d1   : > { %816 = shalt.err (!%p813_p0)
}
 0x2d2   : > { %739 = dma.vmem_to_hbm [thread:$0]  (%p935_p5), %s1023_s20, 32, %s1021_s23, %s599_s28  }
 0x2d3 PF: > { %p745_p1 = scmp.ge.s32.totalorder %s851_s27, 2  ;;  %s624_s21 = sand.u32 1, %s839_s24  }
 0x2d4   : > { %s625_s22 = scalar_lea.sflag [#allocation3], %s624_s21 }
 0x2d5   : > { %p742_p2 = pnand %p745_p1, %p939_p6 }
 0x2d7   : > { %834 = dma.done.wait (!%p742_p2), %s625_s22, 32  }
 0x2d8   : > { %836 = vsyncadd (!%p742_p2), %s625_s22, 4294967264  ;;  %p17_p3 = scmp.ge.s32.totalorder %s922_s30, 4   ;;  %s1073_s24 = smov %s843_s25 }
 0x2d9   : > { %s1074_s25 = smov %s847_s26  ;;  %s1075_s26 = smov %s933_s10 }
 0x2da   : > { %s1076_s27 = smov %s922_s30  ;;  %19 = sbr.rel (!%p17_p3) target bundleno = 3 (0x3), region = 83 }
 0x2e1   :  { %630 = vsyncpa [#allocation3], 1 }
 0x2e2   :  { %632 = vsyncpa [#allocation3 + $0x1], 1 }

</bundles_post_ra>
